<compile_context>
chip_gen: v5e
topology: v5e:2x2
jax: 0.10.0
libtpu: 0.0.40
codegen_flags: <defaults>
</compile_context>

<pallas_src>
import math
from functools import partial

import jax
import jax.numpy as jnp
from jax.experimental import pallas as pl
from jax.experimental.pallas import tpu as pltpu

# ----------------------- small config (GraniteConfig-consistent) -------------
EMB_DIM = 32
NHEADS = 4
HEAD_DIM = EMB_DIM // NHEADS            # emb_kq == emb_v == emb_dim // nheads
NORM_EPS = 1e-5
HIDDEN_GROW_FACTOR = 8.0 / 3.0
MULTIPLE_OF = 8                          # keep MLP small for this synthetic run
HIDDEN_DIM = MULTIPLE_OF * (
    (int(HIDDEN_GROW_FACTOR * EMB_DIM) + MULTIPLE_OF - 1) // MULTIPLE_OF
)                                        # = 88
ROPE_THETA = 10000.0
RESIDUAL_MULTIPLIER = 0.5
ATTENTION_MULTIPLIER = 1.0 / math.sqrt(HEAD_DIM)   # SDPA `scale` arg in fms MHA

BATCH = 2
SEQ = 8

LANE = 128                               # TPU lane width; all packed sections align to it


def _round_up(x, m):
    return ((x + m - 1) // m) * m


# ------------------------------- Pallas kernel --------------------------------
def granite_block_kernel(
    x_ref,        # [BS, D]        flattened activations
    nw_ref,       # [2, D]         row 0 = ln weight, row 1 = ff_ln weight
    aux_ref,      # [H*BS, 4*128]  = [cos (rows<BS) | sin (rows<BS) | head-select | bias]
    win_ref,      # [D, 1024]      = [Wq*a|WqJ*a|Wk|WkJ|Wv] (5x128) | Wo (@640) | [Wg|W1] (@768)
    w2_ref,       # [hidden_pad, D]
    o_ref,        # [BS, D]
    *,
    nheads: int,
    seqlen_bs: int,
    hidden_pad: int,
    off_wo: int,
    off_wgu: int,
    res_mult: float,
    eps: float,
):
    BS = seqlen_bs
    HBS = nheads * BS
    D = x_ref.shape[1]

    x = x_ref[...].astype(jnp.float32)                       # [BS, D]

    nw = nw_ref[...]
    ln_w = nw[0:1, :]
    ff_ln_w = nw[1:2, :]

    aux = aux_ref[...]
    cosP = aux[0:BS, 0 * LANE:1 * LANE]                       # [BS, 128]
    sinP = aux[0:BS, 1 * LANE:2 * LANE]
    hsel = aux[:, 2 * LANE:3 * LANE]                          # [HBS, 128]  head-block select
    bias = aux[:, 3 * LANE:3 * LANE + HBS]                    # [HBS, HBS]  additive causal mask

    w = win_ref[...]
    w_qkv = w[:, :5 * LANE]                                   # [D, 640]
    w_o = w[:, off_wo:off_wo + D]                             # [D, D]   (stacked Wo)
    w_gu = w[:, off_wgu:off_wgu + 2 * hidden_pad]             # [D, 256]

    # ---- RMSNorm #1 (use_mean=False, scale only, high precision) ----
    var = jnp.mean(x * x, axis=-1, keepdims=True)
    x_ln = x * jax.lax.rsqrt(var + eps) * ln_w

    # ---- fused QKV projection; RoPE pair-swap and SDPA scale folded into the weights ----
    proj = jnp.dot(x_ln, w_qkv, preferred_element_type=jnp.float32)    # [BS, 640]
    # interleaved RoPE: rot(x) = x*cos + (x @ J)*sin   (pad lanes stay exactly 0)
    q = proj[:, 0 * LANE:1 * LANE] * cosP + proj[:, 1 * LANE:2 * LANE] * sinP
    k = proj[:, 2 * LANE:3 * LANE] * cosP + proj[:, 3 * LANE:4 * LANE] * sinP
    v = proj[:, 4 * LANE:5 * LANE]

    # ---- head-stacked attention: replicate along sublanes, select per-head lane block ----
    q_r = jnp.concatenate([q] * nheads, axis=0) * hsel        # [HBS, 128] head-selected
    k_r = jnp.concatenate([k] * nheads, axis=0)               # [HBS, 128] (selection not needed)
    v_r = jnp.concatenate([v] * nheads, axis=0) * hsel        # [HBS, 128] head-selected

    # one score matmul for all heads; cross-head/cross-batch/acausal entries masked by bias
    s = jax.lax.dot_general(
        q_r, k_r, (((1,), (1,)), ((), ())),
        preferred_element_type=jnp.float32) + bias            # [HBS, HBS]

    m = jnp.max(s, axis=-1, keepdims=True)
    p = jnp.exp(s - m)
    inv = pl.reciprocal(jnp.sum(p, axis=-1, keepdims=True), approx=True)
    p = p * inv

    o_st = jnp.dot(p, v_r, preferred_element_type=jnp.float32)          # [HBS, 128]
    a_big = jnp.dot(o_st[:, :D], w_o, preferred_element_type=jnp.float32)  # [HBS, D]

    # per-head contributions live in sublane row blocks; sum them (cheap VALU adds)
    attn = a_big[0:BS, :]
    for h in range(1, nheads):
        attn = attn + a_big[h * BS:(h + 1) * BS, :]

    x = attn * res_mult + x                                              # residual 1

    # ---- RMSNorm #2 + GatedLinearUnit (swish gate), fused & lane-padded ----
    var2 = jnp.mean(x * x, axis=-1, keepdims=True)
    x_ff = x * jax.lax.rsqrt(var2 + eps) * ff_ln_w

    gu = jnp.dot(x_ff, w_gu, preferred_element_type=jnp.float32)         # [BS, 256]
    g = gu[:, :hidden_pad]
    u = gu[:, hidden_pad:]
    hdn = (g * jax.nn.sigmoid(g)) * u                                    # swish(g)*u
    y = jnp.dot(hdn, w2_ref[...], preferred_element_type=jnp.float32)    # [BS, D]

    o_ref[...] = (y * res_mult + x).astype(o_ref.dtype)                  # residual 2


# --------------------------------- wrapper ------------------------------------
def granite_block(x, params, *, attn_scale, res_mult, eps):
    B, S, D = x.shape
    H, _, hd = params["wq"].shape
    nQ = H * hd
    assert nQ == D, "emb_kq * nheads must equal emb_dim for this block"
    hidden = params["wg"].shape[1]
    hidden_pad = _round_up(hidden, LANE)         # lane-dense MLP (zeros are exact)
    BS = B * S
    HBS = H * BS
    assert HBS <= LANE, "stacked-head attention packs the bias into one 128-lane section"

    # ---- host-side (one-time) weight fusion / padding / packing ----
    J = params["J"]
    wq = params["wq"] * attn_scale               # fold SDPA scale into the q projection
    wk, wv, wo = params["wk"], params["wv"], params["wo"]
    wqJ = jnp.einsum("hde,ef->hdf", wq, J)       # fold RoPE pair-swap into weights
    wkJ = jnp.einsum("hde,ef->hdf", wk, J)

    def heads_to_cols_pad(wt):                   # [H, D, hd] -> [D, 128] head-major, zero-padded
        cols = jnp.transpose(wt, (1, 0, 2)).reshape(D, H * hd)
        return jnp.pad(cols, ((0, 0), (0, LANE - H * hd)))

    w_qkv = jnp.concatenate(
        [heads_to_cols_pad(wt) for wt in (wq, wqJ, wk, wkJ, wv)], axis=1)   # [D, 640]
    wo_cat = wo.reshape(H * hd, D)               # [D, D]  (H*hd == D rows)

    pad_c = hidden_pad - hidden
    wg_p = jnp.pad(params["wg"], ((0, 0), (0, pad_c)))
    w1_p = jnp.pad(params["w1"], ((0, 0), (0, pad_c)))
    w2_p = jnp.pad(params["w2"], ((0, pad_c), (0, 0)))          # [hidden_pad, D]
    w_gu = jnp.concatenate([wg_p, w1_p], axis=1)                # [D, 2*hidden_pad]

    # pack all D-row weights into one slab, every section 128-lane aligned
    off_wo = 5 * LANE                                           # 640
    off_wgu = _round_up(off_wo + D, LANE)                       # 768
    slab_w = off_wgu + 2 * hidden_pad                           # 1024
    w_in = jnp.zeros((D, slab_w), jnp.float32)
    w_in = w_in.at[:, :5 * LANE].set(w_qkv)
    w_in = w_in.at[:, off_wo:off_wo + D].set(wo_cat)
    w_in = w_in.at[:, off_wgu:off_wgu + 2 * hidden_pad].set(w_gu)

    # aux: [HBS, 4*128] = [cos | sin | head-select mask | additive causal bias], 128-aligned
    cos_bs = jnp.tile(params["cos"], (B, 1))                    # [BS, hd]
    sin_bs = jnp.tile(params["sin"], (B, 1))
    cosH = jnp.pad(jnp.tile(cos_bs, (1, H)), ((0, HBS - BS), (0, LANE - nQ)))   # [HBS, 128]
    sinH = jnp.pad(jnp.tile(sin_bs, (1, H)), ((0, HBS - BS), (0, LANE - nQ)))

    lane = jnp.arange(LANE)
    rowh = jnp.arange(HBS) // BS
    hsel = (((lane[None, :] // hd) == rowh[:, None]) & (lane[None, :] < nQ))
    hsel = hsel.astype(jnp.float32)                             # [HBS, 128]

    idx = jnp.arange(HBS)
    hid = idx // BS
    bid = (idx % BS) // S
    sid = idx % S
    keep = ((hid[:, None] == hid[None, :])
            & (bid[:, None] == bid[None, :])
            & (sid[:, None] >= sid[None, :]))
    bias = jnp.where(keep, 0.0, -1e30).astype(jnp.float32)      # [HBS, HBS] additive mask
    bias_p = jnp.pad(bias, ((0, 0), (0, LANE - HBS)))           # [HBS, 128]

    aux = jnp.concatenate([cosH, sinH, hsel, bias_p], axis=1)   # [HBS, 512]

    norm_w = jnp.concatenate([params["ln_w"], params["ff_ln_w"]], axis=0)  # [2, D]
    x_flat = x.reshape(BS, D)

    kernel = partial(
        granite_block_kernel,
        nheads=H, seqlen_bs=BS, hidden_pad=hidden_pad,
        off_wo=off_wo, off_wgu=off_wgu,
        res_mult=res_mult, eps=eps,
    )

    out = pl.pallas_call(
        kernel,
        out_shape=jax.ShapeDtypeStruct((BS, D), x.dtype),
        grid_spec=pltpu.PrefetchScalarGridSpec(
            num_scalar_prefetch=0,
            grid=(1,),                            # single invocation: batch folded in
            in_specs=[
                pl.BlockSpec((BS, D), lambda i: (0, 0)),
                pl.BlockSpec((2, D), lambda i: (0, 0)),
                pl.BlockSpec((HBS, 4 * LANE), lambda i: (0, 0)),
                pl.BlockSpec((D, slab_w), lambda i: (0, 0)),
                pl.BlockSpec((hidden_pad, D), lambda i: (0, 0)),
            ],
            out_specs=pl.BlockSpec((BS, D), lambda i: (0, 0)),
        ),
        compiler_params=pltpu.CompilerParams(
            dimension_semantics=("arbitrary",)),
    )(x_flat, norm_w, aux, w_in, w2_p)

    return out.reshape(B, S, D)


# ------------------------- pure-JAX reference (sanity) -------------------------
def granite_block_ref(x, params, *, attn_scale, res_mult, eps):
    def rms(vv, w):
        return vv * jax.lax.rsqrt(jnp.mean(vv * vv, -1, keepdims=True) + eps) * w

    B, S, D = x.shape
    cos, sin, J = params["cos"], params["sin"], params["J"]
    x_ln = rms(x, params["ln_w"][0])
    q = jnp.einsum("bsd,hde->bhse", x_ln, params["wq"])
    k = jnp.einsum("bsd,hde->bhse", x_ln, params["wk"])
    v = jnp.einsum("bsd,hde->bhse", x_ln, params["wv"])
    q = q * cos + jnp.einsum("bhse,ef->bhsf", q, J) * sin
    k = k * cos + jnp.einsum("bhse,ef->bhsf", k, J) * sin
    s = jnp.einsum("bhqe,bhke->bhqk", q, k) * attn_scale
    mask = jnp.arange(S)[:, None] >= jnp.arange(S)[None, :]
    s = jnp.where(mask, s, -jnp.inf)
    p = jax.nn.softmax(s, axis=-1)
    o = jnp.einsum("bhqk,bhke->bhqe", p, v)
    attn = jnp.einsum("bhse,hed->bsd", o, params["wo"])
    x = attn * res_mult + x
    x_ff = rms(x, params["ff_ln_w"][0])
    g = x_ff @ params["wg"]
    u = x_ff @ params["w1"]
    y = ((g * jax.nn.sigmoid(g)) * u) @ params["w2"]
    return y * res_mult + x


# ----------------------------------- main --------------------------------------
if __name__ == "__main__":
    B, S, D, H, hd, hidden = BATCH, SEQ, EMB_DIM, NHEADS, HEAD_DIM, HIDDEN_DIM

    key = jax.random.PRNGKey(0)
    ks = jax.random.split(key, 10)

    def nrm(k, shape, scale):
        return jax.random.normal(k, shape, jnp.float32) * scale

    # RoPE tables (interleaved complex-pair convention, positions 0..S-1)
    pos = jnp.arange(S, dtype=jnp.float32)
    inv_freq = 1.0 / (ROPE_THETA ** (jnp.arange(0, hd, 2, dtype=jnp.float32) / hd))
    ang = pos[:, None] * inv_freq[None, :]                       # [S, hd/2]
    cos = jnp.repeat(jnp.cos(ang), 2, axis=-1)                   # [S, hd]
    sin = jnp.repeat(jnp.sin(ang), 2, axis=-1)                   # [S, hd]
    J = jnp.zeros((hd, hd), jnp.float32)
    ev = jnp.arange(0, hd, 2)
    J = J.at[ev + 1, ev].set(-1.0).at[ev, ev + 1].set(1.0)       # signed pair swap

    params = {
        "ln_w":    (1.0 + nrm(ks[0], (1, D), 0.02)),
        "ff_ln_w": (1.0 + nrm(ks[1], (1, D), 0.02)),
        "wq": nrm(ks[2], (H, D, hd), 0.05),
        "wk": nrm(ks[3], (H, D, hd), 0.05),
        "wv": nrm(ks[4], (H, D, hd), 0.05),
        "wo": nrm(ks[5], (H, hd, D), 0.05),
        "wg": nrm(ks[6], (D, hidden), 0.05),
        "w1": nrm(ks[7], (D, hidden), 0.05),
        "w2": nrm(ks[8], (hidden, D), 0.05),
        "cos": cos, "sin": sin, "J": J,
    }

    x = nrm(ks[9], (B, S, D), 1.0)

    out = granite_block(
        x, params,
        attn_scale=ATTENTION_MULTIPLIER,
        res_mult=RESIDUAL_MULTIPLIER,
        eps=NORM_EPS,
    )
    out = jax.block_until_ready(out)

    ref = granite_block_ref(
        x, params,
        attn_scale=ATTENTION_MULTIPLIER,
        res_mult=RESIDUAL_MULTIPLIER,
        eps=NORM_EPS,
    )
    assert out.shape == (B, S, D)
    assert jnp.allclose(out, ref, atol=1e-4, rtol=1e-4), "mismatch vs JAX reference"

    print("KERNEL_OK")
</pallas_src>

<mosaic_0001>
module attributes {stable_mosaic.version = 11 : i64} {
  func.func @granite_block_kernel(%arg0: i32, %arg1: memref<16x32xf32, #tpu.memory_space<vmem>>, %arg2: memref<2x32xf32, #tpu.memory_space<vmem>>, %arg3: memref<64x512xf32, #tpu.memory_space<vmem>>, %arg4: memref<32x1024xf32, #tpu.memory_space<vmem>>, %arg5: memref<128x32xf32, #tpu.memory_space<vmem>>, %arg6: memref<16x32xf32, #tpu.memory_space<vmem>>) attributes {dimension_semantics = [#tpu.dimension_semantics<arbitrary>], iteration_bounds = array<i64: 1>, scalar_prefetch = 0 : i64, scratch_operands = 0 : i64, tpu.core_type = #tpu.core_type<tc>, window_params = [{pipeline_mode = #tpu.pipeline_mode<synchronous>, transform_indices = @transform_0, window_bounds = array<i64: 16, 32>}, {pipeline_mode = #tpu.pipeline_mode<synchronous>, transform_indices = @transform_1, window_bounds = array<i64: 2, 32>}, {pipeline_mode = #tpu.pipeline_mode<synchronous>, transform_indices = @transform_2, window_bounds = array<i64: 64, 512>}, {pipeline_mode = #tpu.pipeline_mode<synchronous>, transform_indices = @transform_3, window_bounds = array<i64: 32, 1024>}, {pipeline_mode = #tpu.pipeline_mode<synchronous>, transform_indices = @transform_4, window_bounds = array<i64: 128, 32>}, {pipeline_mode = #tpu.pipeline_mode<synchronous>, transform_indices = @transform_5, window_bounds = array<i64: 16, 32>}]} {
    %c0 = arith.constant 0 : index
    %c0_0 = arith.constant 0 : index
    %0 = vector.load %arg1[%c0, %c0_0] : memref<16x32xf32, #tpu.memory_space<vmem>>, vector<16x32xf32>
    %c0_1 = arith.constant 0 : index
    %c0_2 = arith.constant 0 : index
    %1 = vector.load %arg2[%c0_1, %c0_2] : memref<2x32xf32, #tpu.memory_space<vmem>>, vector<2x32xf32>
    %2 = vector.extract_strided_slice %1 {offsets = [0, 0], sizes = [1, 32], strides = [1, 1]} : vector<2x32xf32> to vector<1x32xf32>
    %3 = vector.extract_strided_slice %1 {offsets = [1, 0], sizes = [1, 32], strides = [1, 1]} : vector<2x32xf32> to vector<1x32xf32>
    %c0_3 = arith.constant 0 : index
    %c0_4 = arith.constant 0 : index
    %4 = vector.load %arg3[%c0_3, %c0_4] : memref<64x512xf32, #tpu.memory_space<vmem>>, vector<64x512xf32>
    %5 = vector.extract_strided_slice %4 {offsets = [0, 0], sizes = [16, 128], strides = [1, 1]} : vector<64x512xf32> to vector<16x128xf32>
    %6 = vector.extract_strided_slice %4 {offsets = [0, 128], sizes = [16, 128], strides = [1, 1]} : vector<64x512xf32> to vector<16x128xf32>
    %7 = vector.extract_strided_slice %4 {offsets = [0, 256], sizes = [64, 128], strides = [1, 1]} : vector<64x512xf32> to vector<64x128xf32>
    %8 = vector.extract_strided_slice %4 {offsets = [0, 384], sizes = [64, 64], strides = [1, 1]} : vector<64x512xf32> to vector<64x64xf32>
    %c0_5 = arith.constant 0 : index
    %c0_6 = arith.constant 0 : index
    %9 = vector.load %arg4[%c0_5, %c0_6] : memref<32x1024xf32, #tpu.memory_space<vmem>>, vector<32x1024xf32>
    %10 = vector.extract_strided_slice %9 {offsets = [0, 0], sizes = [32, 640], strides = [1, 1]} : vector<32x1024xf32> to vector<32x640xf32>
    %11 = vector.extract_strided_slice %9 {offsets = [0, 640], sizes = [32, 32], strides = [1, 1]} : vector<32x1024xf32> to vector<32x32xf32>
    %12 = vector.extract_strided_slice %9 {offsets = [0, 768], sizes = [32, 256], strides = [1, 1]} : vector<32x1024xf32> to vector<32x256xf32>
    %13 = arith.mulf %0, %0 : vector<16x32xf32>
    %cst = arith.constant dense<0.000000e+00> : vector<16xf32>
    %14 = vector.multi_reduction <add>, %13, %cst [1] : vector<16x32xf32> to vector<16xf32>
    %15 = vector.shape_cast %14 : vector<16xf32> to vector<16x1xf32>
    %cst_7 = arith.constant 3.200000e+01 : f32
    %16 = vector.broadcast %cst_7 : f32 to vector<16x1xf32>
    %17 = arith.divf %15, %16 : vector<16x1xf32>
    %cst_8 = arith.constant 9.99999974E-6 : f32
    %18 = vector.broadcast %cst_8 : f32 to vector<16x1xf32>
    %19 = arith.addf %17, %18 : vector<16x1xf32>
    %20 = math.rsqrt %19 : vector<16x1xf32>
    %21 = vector.broadcast %20 : vector<16x1xf32> to vector<16x32xf32>
    %22 = arith.mulf %0, %21 : vector<16x32xf32>
    %23 = vector.broadcast %2 : vector<1x32xf32> to vector<16x32xf32>
    %24 = arith.mulf %22, %23 : vector<16x32xf32>
    %cst_9 = arith.constant dense<0.000000e+00> : vector<16x640xf32>
    %25 = tpu.matmul %24, %10, %cst_9 {dimension_numbers = #tpu.dot_dimension_numbers<[1], [0], [0], [1], [0, 0, 1, 1], [], []>} : vector<16x32xf32>, vector<32x640xf32>, vector<16x640xf32> -> vector<16x640xf32>
    %26 = vector.extract_strided_slice %25 {offsets = [0, 0], sizes = [16, 128], strides = [1, 1]} : vector<16x640xf32> to vector<16x128xf32>
    %27 = arith.mulf %26, %5 : vector<16x128xf32>
    %28 = vector.extract_strided_slice %25 {offsets = [0, 128], sizes = [16, 128], strides = [1, 1]} : vector<16x640xf32> to vector<16x128xf32>
    %29 = arith.mulf %28, %6 : vector<16x128xf32>
    %30 = arith.addf %27, %29 : vector<16x128xf32>
    %31 = vector.extract_strided_slice %25 {offsets = [0, 256], sizes = [16, 128], strides = [1, 1]} : vector<16x640xf32> to vector<16x128xf32>
    %32 = arith.mulf %31, %5 : vector<16x128xf32>
    %33 = vector.extract_strided_slice %25 {offsets = [0, 384], sizes = [16, 128], strides = [1, 1]} : vector<16x640xf32> to vector<16x128xf32>
    %34 = arith.mulf %33, %6 : vector<16x128xf32>
    %35 = arith.addf %32, %34 : vector<16x128xf32>
    %36 = vector.extract_strided_slice %25 {offsets = [0, 512], sizes = [16, 128], strides = [1, 1]} : vector<16x640xf32> to vector<16x128xf32>
    %37 = tpu.concatenate %30, %30, %30, %30 in 0 : vector<16x128xf32>, vector<16x128xf32>, vector<16x128xf32>, vector<16x128xf32> -> vector<64x128xf32>
    %38 = arith.mulf %37, %7 : vector<64x128xf32>
    %39 = tpu.concatenate %35, %35, %35, %35 in 0 : vector<16x128xf32>, vector<16x128xf32>, vector<16x128xf32>, vector<16x128xf32> -> vector<64x128xf32>
    %40 = tpu.concatenate %36, %36, %36, %36 in 0 : vector<16x128xf32>, vector<16x128xf32>, vector<16x128xf32>, vector<16x128xf32> -> vector<64x128xf32>
    %41 = arith.mulf %40, %7 : vector<64x128xf32>
    %cst_10 = arith.constant dense<0.000000e+00> : vector<64x64xf32>
    %42 = tpu.matmul %38, %39, %cst_10 {dimension_numbers = #tpu.dot_dimension_numbers<[1], [1], [0], [0], [0, 0, 1, 0], [], []>} : vector<64x128xf32>, vector<64x128xf32>, vector<64x64xf32> -> vector<64x64xf32>
    %43 = arith.addf %42, %8 : vector<64x64xf32>
    %cst_11 = arith.constant dense<0xFF800000> : vector<64xf32>
    %44 = vector.multi_reduction <maximumf>, %43, %cst_11 [1] : vector<64x64xf32> to vector<64xf32>
    %45 = vector.shape_cast %44 : vector<64xf32> to vector<64x1xf32>
    %46 = vector.broadcast %45 : vector<64x1xf32> to vector<64x64xf32>
    %47 = arith.subf %43, %46 : vector<64x64xf32>
    %48 = math.exp %47 : vector<64x64xf32>
    %cst_12 = arith.constant dense<0.000000e+00> : vector<64xf32>
    %49 = vector.multi_reduction <add>, %48, %cst_12 [1] : vector<64x64xf32> to vector<64xf32>
    %50 = vector.shape_cast %49 : vector<64xf32> to vector<64x1xf32>
    %51 = tpu.reciprocal %50 {approx = true} : vector<64x1xf32> -> vector<64x1xf32>
    %52 = vector.broadcast %51 : vector<64x1xf32> to vector<64x64xf32>
    %53 = arith.mulf %48, %52 : vector<64x64xf32>
    %cst_13 = arith.constant dense<0.000000e+00> : vector<64x128xf32>
    %54 = tpu.matmul %53, %41, %cst_13 {dimension_numbers = #tpu.dot_dimension_numbers<[1], [0], [0], [1], [0, 0, 1, 1], [], []>} : vector<64x64xf32>, vector<64x128xf32>, vector<64x128xf32> -> vector<64x128xf32>
    %55 = vector.extract_strided_slice %54 {offsets = [0, 0], sizes = [64, 32], strides = [1, 1]} : vector<64x128xf32> to vector<64x32xf32>
    %cst_14 = arith.constant dense<0.000000e+00> : vector<64x32xf32>
    %56 = tpu.matmul %55, %11, %cst_14 {dimension_numbers = #tpu.dot_dimension_numbers<[1], [0], [0], [1], [0, 0, 1, 1], [], []>} : vector<64x32xf32>, vector<32x32xf32>, vector<64x32xf32> -> vector<64x32xf32>
    %57 = vector.extract_strided_slice %56 {offsets = [0, 0], sizes = [16, 32], strides = [1, 1]} : vector<64x32xf32> to vector<16x32xf32>
    %58 = vector.extract_strided_slice %56 {offsets = [16, 0], sizes = [16, 32], strides = [1, 1]} : vector<64x32xf32> to vector<16x32xf32>
    %59 = arith.addf %57, %58 : vector<16x32xf32>
    %60 = vector.extract_strided_slice %56 {offsets = [32, 0], sizes = [16, 32], strides = [1, 1]} : vector<64x32xf32> to vector<16x32xf32>
    %61 = arith.addf %59, %60 : vector<16x32xf32>
    %62 = vector.extract_strided_slice %56 {offsets = [48, 0], sizes = [16, 32], strides = [1, 1]} : vector<64x32xf32> to vector<16x32xf32>
    %63 = arith.addf %61, %62 : vector<16x32xf32>
    %cst_15 = arith.constant 5.000000e-01 : f32
    %64 = vector.broadcast %cst_15 : f32 to vector<16x32xf32>
    %65 = arith.mulf %63, %64 : vector<16x32xf32>
    %66 = arith.addf %65, %0 : vector<16x32xf32>
    %67 = arith.mulf %66, %66 : vector<16x32xf32>
    %cst_16 = arith.constant dense<0.000000e+00> : vector<16xf32>
    %68 = vector.multi_reduction <add>, %67, %cst_16 [1] : vector<16x32xf32> to vector<16xf32>
    %69 = vector.shape_cast %68 : vector<16xf32> to vector<16x1xf32>
    %cst_17 = arith.constant 3.200000e+01 : f32
    %70 = vector.broadcast %cst_17 : f32 to vector<16x1xf32>
    %71 = arith.divf %69, %70 : vector<16x1xf32>
    %cst_18 = arith.constant 9.99999974E-6 : f32
    %72 = vector.broadcast %cst_18 : f32 to vector<16x1xf32>
    %73 = arith.addf %71, %72 : vector<16x1xf32>
    %74 = math.rsqrt %73 : vector<16x1xf32>
    %75 = vector.broadcast %74 : vector<16x1xf32> to vector<16x32xf32>
    %76 = arith.mulf %66, %75 : vector<16x32xf32>
    %77 = vector.broadcast %3 : vector<1x32xf32> to vector<16x32xf32>
    %78 = arith.mulf %76, %77 : vector<16x32xf32>
    %cst_19 = arith.constant dense<0.000000e+00> : vector<16x256xf32>
    %79 = tpu.matmul %78, %12, %cst_19 {dimension_numbers = #tpu.dot_dimension_numbers<[1], [0], [0], [1], [0, 0, 1, 1], [], []>} : vector<16x32xf32>, vector<32x256xf32>, vector<16x256xf32> -> vector<16x256xf32>
    %80 = vector.extract_strided_slice %79 {offsets = [0, 0], sizes = [16, 128], strides = [1, 1]} : vector<16x256xf32> to vector<16x128xf32>
    %81 = vector.extract_strided_slice %79 {offsets = [0, 128], sizes = [16, 128], strides = [1, 1]} : vector<16x256xf32> to vector<16x128xf32>
    %82 = arith.negf %80 : vector<16x128xf32>
    %83 = math.exp %82 : vector<16x128xf32>
    %cst_20 = arith.constant 1.000000e+00 : f32
    %84 = vector.broadcast %cst_20 : f32 to vector<16x128xf32>
    %85 = arith.addf %84, %83 : vector<16x128xf32>
    %86 = arith.divf %84, %85 : vector<16x128xf32>
    %87 = arith.mulf %80, %86 : vector<16x128xf32>
    %88 = arith.mulf %87, %81 : vector<16x128xf32>
    %c0_21 = arith.constant 0 : index
    %c0_22 = arith.constant 0 : index
    %89 = vector.load %arg5[%c0_21, %c0_22] : memref<128x32xf32, #tpu.memory_space<vmem>>, vector<128x32xf32>
    %cst_23 = arith.constant dense<0.000000e+00> : vector<16x32xf32>
    %90 = tpu.matmul %88, %89, %cst_23 {dimension_numbers = #tpu.dot_dimension_numbers<[1], [0], [0], [1], [0, 0, 1, 1], [], []>} : vector<16x128xf32>, vector<128x32xf32>, vector<16x32xf32> -> vector<16x32xf32>
    %cst_24 = arith.constant 5.000000e-01 : f32
    %91 = vector.broadcast %cst_24 : f32 to vector<16x32xf32>
    %92 = arith.mulf %90, %91 : vector<16x32xf32>
    %93 = arith.addf %92, %66 : vector<16x32xf32>
    %c0_25 = arith.constant 0 : index
    %c0_26 = arith.constant 0 : index
    %94 = vector.load %arg6[%c0_25, %c0_26] : memref<16x32xf32, #tpu.memory_space<vmem>>, vector<16x32xf32>
    tpu.vector_store %arg6[%c0_25, %c0_26], %93 {strides = array<i32>} : memref<16x32xf32, #tpu.memory_space<vmem>>, vector<16x32xf32>,
    return
  }
  func.func @transform_0(%arg0: i32) -> (i32, i32) {
    %c0_i32 = arith.constant 0 : i32
    %c0_i32_0 = arith.constant 0 : i32
    %c0_i32_1 = arith.constant 0 : i32
    return %c0_i32, %c0_i32_0 : i32, i32
  }
  func.func @transform_1(%arg0: i32) -> (i32, i32) {
    %c0_i32 = arith.constant 0 : i32
    %c0_i32_0 = arith.constant 0 : i32
    %c0_i32_1 = arith.constant 0 : i32
    return %c0_i32, %c0_i32_0 : i32, i32
  }
  func.func @transform_2(%arg0: i32) -> (i32, i32) {
    %c0_i32 = arith.constant 0 : i32
    %c0_i32_0 = arith.constant 0 : i32
    %c0_i32_1 = arith.constant 0 : i32
    return %c0_i32, %c0_i32_0 : i32, i32
  }
  func.func @transform_3(%arg0: i32) -> (i32, i32) {
    %c0_i32 = arith.constant 0 : i32
    %c0_i32_0 = arith.constant 0 : i32
    %c0_i32_1 = arith.constant 0 : i32
    return %c0_i32, %c0_i32_0 : i32, i32
  }
  func.func @transform_4(%arg0: i32) -> (i32, i32) {
    %c0_i32 = arith.constant 0 : i32
    %c0_i32_0 = arith.constant 0 : i32
    %c0_i32_1 = arith.constant 0 : i32
    return %c0_i32, %c0_i32_0 : i32, i32
  }
  func.func @transform_5(%arg0: i32) -> (i32, i32) {
    %c0_i32 = arith.constant 0 : i32
    %c0_i32_0 = arith.constant 0 : i32
    %c0_i32_1 = arith.constant 0 : i32
    return %c0_i32, %c0_i32_0 : i32, i32
  }
}

</mosaic_0001>

<bundles_post_ra>
// kernel: tpu_custom_call.1
= control target key start
LH: loop header
LB: loop body
LE: loop exit
PB: predicated region body
PF: predicated region fallthrough
CT: control target
= control target key end

     0   :  { %10 = vsyncpa [#allocation3], 0  ;;  %s1134_s0 = inlined_call_operand.vmem [shape: f32[16,32], index: 0, kind: input, shape index: {}]   ;;  %s1135_s1 = inlined_call_operand.vmem [shape: f32[2,32], index: 1, kind: input, shape index: {}]   ;;  %s1136_s2 = inlined_call_operand.hbm [shape: f32[64,512], index: 2, kind: input, shape index: {}]   ;;  %s1137_s3 = inlined_call_operand.hbm [shape: f32[32,1024], index: 3, kind: input, shape index: {}]   ;;  %s1138_s4 = inlined_call_operand.vmem [shape: f32[128,32], index: 4, kind: input, shape index: {}]   ;;  %s1139_s5 = inlined_call_operand.hbm [shape: f32[16,32], index: 5, kind: output, shape index: {}]  }
   0x1   :  { %11 = vsyncpa [#allocation6], 0 }
   0x2   :  { %12 = vsyncpa [#allocation4], 0  ;;  %s21_s20 = sshll.u32 %s1136_s2, 4  ;;  %s942_s21 = smov [#allocation2]   ;;  %s22_s20 = int_to_ptr.hbm [resolvable:$true] %s21_s20 }
   0x3   :  { %s23_s22 = sshll.u32 %s942_s21, 4  ;;  %s34_s25 = sshll.u32 %s1137_s3, 4  ;;  %s24_s22 = int_to_ptr.vmem [resolvable:$true] %s23_s22  ;;  %s35_s25 = int_to_ptr.hbm [resolvable:$true] %s34_s25 }
   0x4   :  { %s943_s26 = smov 512   ;;  %s944_s27 = smov 32  }
   0x5   :  { %29 = dma.hbm_to_vmem [thread:$0]  %s22_s20, 4096, %s24_s22, [#allocation3], %s943_s26, %s943_s26, %s944_s27  }
   0x6   :  { %s945_s28 = smov [#allocation5]   ;;  %s946_s30 = smov 1024  }
   0x7   :  { %s36_s29 = sshll.u32 %s945_s28, 4  ;;  %s947_s6 = smov 64   ;;  %s37_s29 = int_to_ptr.vmem [resolvable:$true] %s36_s29 }
   0x8   :  { %42 = dma.hbm_to_vmem [thread:$0]  %s35_s25, 4096, %s37_s29, [#allocation6], %s946_s30, %s946_s30, %s947_s6  }
   0x9   :  { %936 = dma.done.wait [#allocation3], 4096  }
   0xa   :  { %937 = vsyncadd [#allocation3], 4294963200 }
   0xb   :  { %938 = dma.done.wait [#allocation6], 4096  }
   0xc   :  { %939 = vsyncadd [#allocation6], 4294963200  ;;  %v991_v0 = vld [vmem:[%s1134_s0 + $0x8] sm:$0xff]  ;;  %vm110_vm0 = vcmask 261120   ;;  %v998_v2 = vld [vmem:[%s1134_s0] sm:$0xff]  ;;  %v948_v6 = vmov 32.0  }
   0xd   :  { %v109_v1 = vmul.f32 %v991_v0, %v991_v0  ;;  %v108_v4 = vmul.f32 %v998_v2, %v998_v2  ;;  %814 = vrcp.f32 %v948_v6  ;;  %v100_v10 = vld [vmem:[#allocation5 + $0xc0] sm:$0xff]  ;;  %v102_v16 = vld [vmem:[#allocation5 + $0xd0] sm:$0xff]  ;;  %v101_v17 = vld [vmem:[#allocation5 + $0xc8] sm:$0xff]  ;;  %vm343_vm8 = vcmask 523264   ;;  %s754_s15 = sshll.u32 %s1139_s5, 4  ;;  %s950_s16 = smov 128   ;;  %s755_s15 = int_to_ptr.hbm [resolvable:$true] %s754_s15 }
   0xe   :  { %800 = vmatpush.msra.mxu2 %v100_v10  ;;  %171 = vmatpush.msra.mxu0 %v100_v10  ;;  %v92_v11 = vld [vmem:[#allocation5 + $0x80] sm:$0xff]  ;;  %v103_v18 = vld [vmem:[#allocation5 + $0xd8] sm:$0xff]  ;;  %v94_v19 = vld [vmem:[#allocation5 + $0x90] sm:$0xff]  ;;  %s951_s17 = smov 8  }
   0xf   :  { %v114_v3 = vsel %vm110_vm0, %v109_v1, 0.0  ;;  %v111_v5 = vsel %vm110_vm0, %v108_v4, 0.0  ;;  %v84_v13 = vld [vmem:[#allocation5 + $0x40] sm:$0xff]  ;;  %194 = vmatpush.msra.mxu1 %v101_v17  ;;  %240 = vmatpush.msra.mxu3 %v103_v18  ;;  %v93_v20 = vld [vmem:[#allocation5 + $0x88] sm:$0xff]  ;;  %v95_v21 = vld [vmem:[#allocation5 + $0x98] sm:$0xff] }
  0x10   :  { %115 = vadd.xlane.f32.xlu0 %v114_v3  ;;  %801 = vmatpush.msra.mxu2 %v92_v11  ;;  %v76_v14 = vld [vmem:[#allocation5] sm:$0xff]  ;;  %v86_v23 = vld [vmem:[#allocation5 + $0x50] sm:$0xff]  ;;  %v85_v24 = vld [vmem:[#allocation5 + $0x48] sm:$0xff] }
  0x11   :  { %172 = vmatpush.msra.mxu0 %v92_v11  ;;  %195 = vmatpush.msra.mxu1 %v93_v20  ;;  %v87_v25 = vld [vmem:[#allocation5 + $0x58] sm:$0xff]  ;;  %v78_v28 = vld [vmem:[#allocation5 + $0x10] sm:$0xff]  ;;  %v77_v29 = vld [vmem:[#allocation5 + $0x8] sm:$0xff] }
  0x12   :  { %802 = vmatpush.msra.mxu2 %v84_v13  ;;  %241 = vmatpush.msra.mxu3 %v95_v21  ;;  %v79_v30 = vld [vmem:[#allocation5 + $0x18] sm:$0xff]  ;;  %v104_v32 = vld [vmem:[#allocation5 + $0xe0] sm:$0xff]  ;;  %v61_v3 = vld [vmem:[#allocation2 + $0x28] sm:$0xff] }
  0x13   :  { %v815_v7 = vpop.eup %814  ;;  %173 = vmatpush.msra.mxu0 %v84_v13  ;;  %196 = vmatpush.msra.mxu1 %v85_v24  ;;  %v96_v33 = vld [vmem:[#allocation5 + $0xa0] sm:$0xff]  ;;  %v57_v11 = vld [vmem:[#allocation2 + $0x8] sm:$0xff]  ;;  %v70_v18 = vld [vmem:[#allocation2 + $0xb0] sm:$0xff] }
  0x14   :  { %v118_v8 = vmul.f32 32.0, %v815_v7  ;;  %803 = vmatpush.msra.mxu2 %v76_v14  ;;  %vm122_vm1 = vweird.f32 %v815_v7  ;;  %242 = vmatpush.msra.mxu3 %v87_v25  ;;  %v88_v34 = vld [vmem:[#allocation5 + $0x60] sm:$0xff]  ;;  %v68_v21 = vld [vmem:[#allocation2 + $0x90] sm:$0xff] }
  0x15   :  { %174 = vmatpush.msra.mxu0 %v76_v14  ;;  %197 = vmatpush.msra.mxu1 %v77_v29  ;;  %v80_v36 = vld [vmem:[#allocation5 + $0x20] sm:$0xff]  ;;  %v66_v24 = vld [vmem:[#allocation2 + $0x70] sm:$0xff] }
  0x16   :  { %v119_v9 = vsub.f32 1.0, %v118_v8  ;;  %217 = vmatpush.msrb.mxu2 %v102_v16  ;;  %243 = vmatpush.msra.mxu3 %v79_v30  ;;  %v1011_v43 = vld [vmem:[%s1135_s1] sm:$0x3]  ;;  %v74_v8 = vld [vmem:[#allocation2 + $0xf0] sm:$0xff] }
  0x17   :  { %263 = vmatpush.msrb.mxu0 %v104_v32  ;;  %v150_v48 = vperm.slane %v1011_v43, 0  ;;  %v60_v1 = vld [vmem:[#allocation2 + $0x20] sm:$0xff]  ;;  %v72_v16 = vld [vmem:[#allocation2 + $0xd0] sm:$0xff] }
  0x18   :  { %112 = vadd.xlane.f32.xlu0 %v111_v5  ;;  %v120_v12 = vmul.f32 %v815_v7, %v119_v9  ;;  %218 = vmatpush.msrb.mxu2 %v94_v19  ;;  %v56_v10 = vld [vmem:[#allocation2] sm:$0xff]  ;;  %v58_v30 = vld [vmem:[#allocation2 + $0x10] sm:$0xff] }
  0x19   :  { %264 = vmatpush.msrb.mxu0 %v96_v33 }
  0x1a   :  { %v121_v15 = vadd.f32 %v815_v7, %v120_v12  ;;  %219 = vmatpush.msrb.mxu2 %v86_v23 }
  0x1b   :  { %265 = vmatpush.msrb.mxu0 %v88_v34 }
  0x1c   :  { %v1004_v22 = vsel %vm122_vm1, %v815_v7, %v121_v15  ;;  %220 = vmatpush.msrb.mxu2 %v78_v28  ;;  %v62_v28 = vld [vmem:[#allocation2 + $0x30] sm:$0xff] }
  0x1d   :  { %266 = vmatpush.msrb.mxu0 %v80_v36 }
  0x83   :  { %v116_v26 = vpop.xlane.xlu0 %115 }
  0x84   :  { %v125_v27 = vmul.f32 %v1004_v22, %v116_v26  ;;  %v64_v26 = vld [vmem:[#allocation2 + $0x50] sm:$0xff] }
  0x86   :  { %v127_v31 = vadd.f32 1e-05, %v125_v27 }
  0x88   :  { %816 = vrsqrt.f32 %v127_v31  ;;  %vm144_vm3 = vweird.f32 %v127_v31 }
  0x8b   :  { %v113_v35 = vpop.xlane.xlu0 %112 }
  0x8c   :  { %v124_v37 = vmul.f32 %v1004_v22, %v113_v35 }
  0x8e   :  { %v817_v38 = vpop.eup %816  ;;  %v126_v39 = vadd.f32 1e-05, %v124_v37 }
  0x8f   :  { %v139_v40 = vmul.f32 %v817_v38, %v127_v31  ;;  %vm145_vm2 = vweird.f32 %v817_v38 }
  0x90   :  { %818 = vrsqrt.f32 %v126_v39  ;;  %vm146_vm4 = vmor %vm144_vm3, %vm145_vm2  ;;  %vm134_vm6 = vweird.f32 %v126_v39 }
  0x91   :  { %v140_v41 = vmul.f32 %v817_v38, %v139_v40 }
  0x93   :  { %v141_v42 = vmul.f32 0.5, %v140_v41 }
  0x95   :  { %v142_v44 = vsub.f32 1.5, %v141_v42 }
  0x96   :  { %v819_v45 = vpop.eup %818 }
  0x97   :  { %v143_v46 = vmul.f32 %v817_v38, %v142_v44  ;;  %v129_v47 = vmul.f32 %v819_v45, %v126_v39  ;;  %vm135_vm5 = vweird.f32 %v819_v45 }
  0x98   :  { %vm136_vm7 = vmor %vm134_vm6, %vm135_vm5 }
  0x99   :  { %v147_v49 = vsel %vm146_vm4, %v817_v38, %v143_v46  ;;  %v130_v50 = vmul.f32 %v819_v45, %v129_v47 }
  0x9a   :  { %v149_v51 = vmul.f32 %v147_v49, %v991_v0  ;;  %v59_v49 = vld [vmem:[#allocation2 + $0x18] sm:$0xff] }
  0x9b   :  { %v131_v52 = vmul.f32 0.5, %v130_v50 }
  0x9c   :  { %v152_v53 = vmul.f32 %v150_v48, %v149_v51 }
  0x9d   :  { %v132_v54 = vsub.f32 1.5, %v131_v52 }
  0x9e   :  { %769 = vmatmul.msk.f32.vlgmr.msra.gmra.mxu2 %vm110_vm0, %v152_v53 }
  0x9f   :  { %v133_v55 = vmul.f32 %v819_v45, %v132_v54 }
  0xa1   :  { %v137_v56 = vsel %vm136_vm7, %v819_v45, %v133_v55 }
  0xa2   :  { %v148_v57 = vmul.f32 %v137_v56, %v998_v2 }
  0xa4   :  { %v151_v58 = vmul.f32 %v150_v48, %v148_v57  ;;  %v65_v57 = vld [vmem:[#allocation2 + $0x58] sm:$0xff] }
  0xa6   :  { %768 = vmatmul.msk.f32.vlgmr.msra.gmra.mxu0 %vm110_vm0, %v151_v58  ;;  %770 = vmatmul.msk.f32.vlgmr.msra.gmra.mxu1 %vm110_vm0, %v151_v58 }
  0xa7   :  { %772 = vmatmul.msk.f32.vlgmr.msrb.gmra.mxu2 %vm110_vm0, %v151_v58  ;;  %774 = vmatmul.msk.f32.vlgmr.msra.gmra.mxu3 %vm110_vm0, %v151_v58 }
  0xae   :  { %771 = vmatmul.msk.f32.gmra.mxu1 %vm110_vm0, %v152_v53  ;;  %776 = vmatmul.msk.f32.vlgmr.msrb.gmra.mxu0 %vm110_vm0, %v151_v58 }
  0xaf   :  { %773 = vmatmul.msk.f32.gmra.mxu2 %vm110_vm0, %v152_v53  ;;  %775 = vmatmul.msk.f32.gmra.mxu3 %vm110_vm0, %v152_v53 }
  0xb6   :  { %777 = vmatmul.msk.f32.gmra.mxu0 %vm110_vm0, %v152_v53  ;;  %v63_v53 = vld [vmem:[#allocation2 + $0x38] sm:$0xff] }
 0x121   :  { %v179_v59 = vpop.f32.mrf.mxu2 }
 0x122   :  { %v275_v39 = vmul.f32 %v179_v59, %v60_v1 }
 0x123   :  { %v176_v60 = vpop.f32.mrf.mxu0  ;;  %v199_v32 = vpop.f32.mrf.mxu1 }
 0x124   :  { %v274_v33 = vmul.f32 %v176_v60, %v56_v10  ;;  %v276_v34 = vmul.f32 %v199_v32, %v57_v11 }
 0x126   :  { %v278_v35 = vadd.f32 %v276_v34, %v274_v33 }
 0x128   :  { %v286_v38 = vmul.f32 %v278_v35, %v58_v30  ;;  %v288_v42 = vmul.f32 %v278_v35, %v64_v26  ;;  %v290_v45 = vmul.f32 %v278_v35, %v68_v21  ;;  %v292_v47 = vmul.f32 %v278_v35, %v72_v16 }
 0x12a   :  { %v222_v61 = vpop.f32.mrf.mxu2  ;;  %v245_v62 = vpop.f32.mrf.mxu3 }
 0x12b   :  { %v268_v63 = vpop.f32.mrf.mxu0  ;;  %v280_v13 = vmul.f32 %v222_v61, %v56_v10  ;;  %v282_v14 = vmul.f32 %v245_v62, %v57_v11  ;;  %v202_v36 = vpop.f32.mrf.mxu1  ;;  %v67_v61 = vld [vmem:[#allocation2 + $0x78] sm:$0xff] }
 0x12c   :  { %v300_v17 = vmul.f32 %v268_v63, %v72_v16  ;;  %v298_v23 = vmul.f32 %v268_v63, %v68_v21  ;;  %v296_v27 = vmul.f32 %v268_v63, %v64_v26  ;;  %v294_v31 = vmul.f32 %v268_v63, %v58_v30  ;;  %v73_v11 = vld [vmem:[#allocation2 + $0xd8] sm:$0xff] }
 0x12d   :  { %v284_v20 = vadd.f32 %v282_v14, %v280_v13  ;;  %v277_v37 = vmul.f32 %v202_v36, %v61_v3 }
 0x12f   :  { %v279_v40 = vadd.f32 %v277_v37, %v275_v39 }
 0x131   :  { %v287_v41 = vmul.f32 %v279_v40, %v62_v28  ;;  %v289_v44 = vmul.f32 %v279_v40, %v66_v24  ;;  %v291_v46 = vmul.f32 %v279_v40, %v70_v18  ;;  %v293_v48 = vmul.f32 %v279_v40, %v74_v8 }
 0x132   :  { %v225_v4 = vpop.f32.mrf.mxu2  ;;  %v248_v5 = vpop.f32.mrf.mxu3 }
 0x133   :  { %v281_v6 = vmul.f32 %v225_v4, %v60_v1  ;;  %v283_v7 = vmul.f32 %v248_v5, %v61_v3  ;;  %v271_v9 = vpop.f32.mrf.mxu0  ;;  %v69_v3 = vld [vmem:[#allocation2 + $0x98] sm:$0xff] }
 0x134   :  { %v301_v12 = vmul.f32 %v271_v9, %v74_v8  ;;  %v299_v19 = vmul.f32 %v271_v9, %v70_v18  ;;  %v297_v25 = vmul.f32 %v271_v9, %v66_v24  ;;  %v295_v29 = vmul.f32 %v271_v9, %v62_v28 }
 0x135   :  { %v285_v15 = vadd.f32 %v283_v7, %v281_v6  ;;  %v71_v7 = vld [vmem:[#allocation2 + $0xb8] sm:$0xff] }
 0x136   :  { %464 = vmatpush.msra.mxu2 %v301_v12 }
 0x137   :  { %310 = vmatpush.xpose.msrb.mxu1 %v285_v15 }
 0x138   :  { %465 = vmatpush.msra.mxu2 %v300_v17 }
 0x13a   :  { %466 = vmatpush.msra.mxu2 %v299_v19 }
 0x13b   :  { %311 = vmatpush.xpose.msrb.mxu1 %v284_v20 }
 0x13c   :  { %467 = vmatpush.msra.mxu2 %v298_v23 }
 0x13e   :  { %468 = vmatpush.msra.mxu2 %v297_v25 }
 0x13f   :  { %312 = vmatpush.xpose.msrb.mxu1 %v285_v15 }
 0x140   :  { %469 = vmatpush.msra.mxu2 %v296_v27 }
 0x142   :  { %470 = vmatpush.msra.mxu2 %v295_v29 }
 0x143   :  { %313 = vmatpush.xpose.msrb.mxu1 %v284_v20 }
 0x144   :  { %471 = vmatpush.msra.mxu2 %v294_v31 }
 0x147   :  { %314 = vmatpush.xpose.msrb.mxu1 %v285_v15 }
 0x14b   :  { %315 = vmatpush.xpose.msrb.mxu1 %v284_v20 }
 0x14f   :  { %316 = vmatpush.xpose.msrb.mxu1 %v285_v15  ;;  %v75_v15 = vld [vmem:[#allocation2 + $0xf8] sm:$0xff] }
 0x153   :  { %317 = vmatpush.xpose.msrb.mxu1 %v284_v20 }
 0x156   :  { %318 = vmatmul.f32.vlgmr.msrb.gmra.mxu1 %v286_v38 }
 0x15e   :  { %321 = vmatmul.f32.gmra.mxu1 %v287_v41 }
 0x166   :  { %324 = vmatmul.f32.gmra.mxu1 %v288_v42 }
 0x16e   :  { %327 = vmatmul.f32.gmra.mxu1 %v289_v44 }
 0x176   :  { %330 = vmatmul.f32.gmra.mxu1 %v290_v45 }
 0x17e   :  { %333 = vmatmul.f32.gmra.mxu1 %v291_v46 }
 0x186   :  { %336 = vmatmul.f32.gmra.mxu1 %v292_v47 }
 0x18e   :  { %339 = vmatmul.f32.gmra.mxu1 %v293_v48 }
 0x1d3   :  { %v319_v50 = vpop.f32.mrf.mxu1 }
 0x1d4   :  { %v320_v51 = vadd.f32 %v319_v50, %v59_v49 }
 0x1d6   :  { %v344_v52 = vsel %vm343_vm8, %v320_v51, -inf }
 0x1d7   :  { %345 = vmax.xlane.f32.xlu1 %v344_v52 }
 0x1db   :  { %v322_v54 = vpop.f32.mrf.mxu1 }
 0x1dc   :  { %v323_v55 = vadd.f32 %v322_v54, %v63_v53 }
 0x1de   :  { %v347_v56 = vsel %vm343_vm8, %v323_v55, -inf }
 0x1df   :  { %348 = vmax.xlane.f32.xlu1 %v347_v56 }
 0x1e3   :  { %v325_v58 = vpop.f32.mrf.mxu1 }
 0x1e4   :  { %v326_v59 = vadd.f32 %v325_v58, %v65_v57 }
 0x1e6   :  { %v350_v60 = vsel %vm343_vm8, %v326_v59, -inf }
 0x1e7   :  { %351 = vmax.xlane.f32.xlu2 %v350_v60 }
 0x1eb   :  { %v328_v62 = vpop.f32.mrf.mxu1 }
 0x1ec   :  { %v329_v63 = vadd.f32 %v328_v62, %v67_v61 }
 0x1ee   :  { %v353_v1 = vsel %vm343_vm8, %v329_v63, -inf }
 0x1ef   :  { %354 = vmax.xlane.f32.xlu2 %v353_v1 }
 0x1f3   :  { %v331_v4 = vpop.f32.mrf.mxu1 }
 0x1f4   :  { %v332_v5 = vadd.f32 %v331_v4, %v69_v3 }
 0x1f6   :  { %v356_v6 = vsel %vm343_vm8, %v332_v5, -inf }
 0x1f7   :  { %357 = vmax.xlane.f32.xlu0 %v356_v6 }
 0x1fb   :  { %v334_v8 = vpop.f32.mrf.mxu1 }
 0x1fc   :  { %v335_v9 = vadd.f32 %v334_v8, %v71_v7 }
 0x1fe   :  { %v359_v10 = vsel %vm343_vm8, %v335_v9, -inf }
 0x1ff   :  { %360 = vmax.xlane.f32.xlu1 %v359_v10 }
 0x203   :  { %v337_v12 = vpop.f32.mrf.mxu1 }
 0x204   :  { %v338_v13 = vadd.f32 %v337_v12, %v73_v11  ;;  %v105_v12 = vld [vmem:[#allocation5 + $0xe8] sm:$0xff] }
 0x205   :  { %533 = vmatpush.msrb.mxu3 %v105_v12 }
 0x206   :  { %v362_v14 = vsel %vm343_vm8, %v338_v13, -inf }
 0x207   :  { %363 = vmax.xlane.f32.xlu2 %v362_v14  ;;  %v89_v14 = vld [vmem:[#allocation5 + $0x68] sm:$0xff] }
 0x20b   :  { %v340_v16 = vpop.f32.mrf.mxu1 }
 0x20c   :  { %v341_v17 = vadd.f32 %v340_v16, %v75_v15  ;;  %v81_v15 = vld [vmem:[#allocation5 + $0x28] sm:$0xff] }
 0x20e   :  { %v365_v18 = vsel %vm343_vm8, %v341_v17, -inf }
 0x20f   :  { %366 = vmax.xlane.f32.xlu1 %v365_v18 }
 0x24a   :  { %v346_v19 = vpop.xlane.xlu1 %345 }
 0x24b   :  { %v368_v20 = vsub.f32 %v320_v51, %v346_v19 }
 0x24d   :  { %v376_v21 = vmul.f32 1.442695, %v368_v20 }
 0x24f   :  { %820 = vpow2.f32 %v376_v21 }
 0x252   :  { %v349_v23 = vpop.xlane.xlu1 %348 }
 0x253   :  { %v369_v24 = vsub.f32 %v323_v55, %v349_v23 }
 0x255   :  { %v821_v25 = vpop.eup %820  ;;  %v378_v26 = vmul.f32 1.442695, %v369_v24 }
 0x256   :  { %v392_v27 = vsel %vm343_vm8, %v821_v25, 0.0 }
 0x257   :  { %822 = vpow2.f32 %v378_v26  ;;  %393 = vadd.xlane.f32.xlu0 %v392_v27 }
 0x25a   :  { %v352_v28 = vpop.xlane.xlu2 %351 }
 0x25b   :  { %v370_v29 = vsub.f32 %v326_v59, %v352_v28 }
 0x25d   :  { %v823_v30 = vpop.eup %822  ;;  %v380_v31 = vmul.f32 1.442695, %v370_v29 }
 0x25e   :  { %v395_v32 = vsel %vm343_vm8, %v823_v30, 0.0 }
 0x25f   :  { %824 = vpow2.f32 %v380_v31  ;;  %396 = vadd.xlane.f32.xlu2 %v395_v32 }
 0x262   :  { %v355_v33 = vpop.xlane.xlu2 %354 }
 0x263   :  { %v371_v34 = vsub.f32 %v329_v63, %v355_v33 }
 0x265   :  { %v825_v35 = vpop.eup %824  ;;  %v382_v36 = vmul.f32 1.442695, %v371_v34 }
 0x266   :  { %v398_v37 = vsel %vm343_vm8, %v825_v35, 0.0 }
 0x267   :  { %826 = vpow2.f32 %v382_v36  ;;  %399 = vadd.xlane.f32.xlu0 %v398_v37 }
 0x26a   :  { %v358_v38 = vpop.xlane.xlu0 %357 }
 0x26b   :  { %v372_v39 = vsub.f32 %v332_v5, %v358_v38 }
 0x26d   :  { %v827_v40 = vpop.eup %826  ;;  %v384_v41 = vmul.f32 1.442695, %v372_v39 }
 0x26e   :  { %v401_v42 = vsel %vm343_vm8, %v827_v40, 0.0 }
 0x26f   :  { %828 = vpow2.f32 %v384_v41  ;;  %402 = vadd.xlane.f32.xlu1 %v401_v42 }
 0x272   :  { %v361_v44 = vpop.xlane.xlu1 %360 }
 0x273   :  { %v373_v45 = vsub.f32 %v335_v9, %v361_v44 }
 0x275   :  { %v829_v46 = vpop.eup %828  ;;  %v386_v47 = vmul.f32 1.442695, %v373_v45 }
 0x276   :  { %v404_v48 = vsel %vm343_vm8, %v829_v46, 0.0 }
 0x277   :  { %830 = vpow2.f32 %v386_v47  ;;  %405 = vadd.xlane.f32.xlu2 %v404_v48 }
 0x27a   :  { %v364_v49 = vpop.xlane.xlu2 %363 }
 0x27b   :  { %v374_v50 = vsub.f32 %v338_v13, %v364_v49  ;;  %v97_v13 = vld [vmem:[#allocation5 + $0xa8] sm:$0xff] }
 0x27c   :  { %534 = vmatpush.msrb.mxu3 %v97_v13 }
 0x27d   :  { %v831_v51 = vpop.eup %830  ;;  %v388_v52 = vmul.f32 1.442695, %v374_v50 }
 0x27e   :  { %v407_v53 = vsel %vm343_vm8, %v831_v51, 0.0  ;;  %535 = vmatpush.msrb.mxu3 %v89_v14 }
 0x27f   :  { %832 = vpow2.f32 %v388_v52  ;;  %408 = vadd.xlane.f32.xlu0 %v407_v53 }
 0x280   :  { %536 = vmatpush.msrb.mxu3 %v81_v15 }
 0x282   :  { %v367_v54 = vpop.xlane.xlu1 %366 }
 0x283   :  { %v375_v55 = vsub.f32 %v341_v17, %v367_v54 }
 0x285   :  { %v833_v56 = vpop.eup %832  ;;  %v390_v57 = vmul.f32 1.442695, %v375_v55 }
 0x286   :  { %v410_v58 = vsel %vm343_vm8, %v833_v56, 0.0 }
 0x287   :  { %834 = vpow2.f32 %v390_v57  ;;  %411 = vadd.xlane.f32.xlu1 %v410_v58 }
 0x28d   :  { %v835_v59 = vpop.eup %834 }
 0x28e   :  { %v413_v60 = vsel %vm343_vm8, %v835_v59, 0.0 }
 0x28f   :  { %414 = vadd.xlane.f32.xlu2 %v413_v60  ;;  %v90_v60 = vld [vmem:[#allocation5 + $0x70] sm:$0xff] }
 0x2ca   :  { %v394_v61 = vpop.xlane.xlu0 %393 }
 0x2cb   :  { %836 = vrcp.f32 %v394_v61  ;;  %v82_v61 = vld [vmem:[#allocation5 + $0x30] sm:$0xff] }
 0x2d1   :  { %v837_v62 = vpop.eup %836 }
 0x2d2   :  { %v424_v63 = vmul.f32 %v837_v62, %v821_v25  ;;  %v397_v1 = vpop.xlane.xlu2 %396 }
 0x2d3   :  { %838 = vrcp.f32 %v397_v1 }
 0x2d4   :  { %778 = vmatmul.msk.f32.vlgmr.msra.gmra.mxu2 %vm343_vm8, %v424_v63 }
 0x2d9   :  { %v839_v3 = vpop.eup %838 }
 0x2da   :  { %v400_v4 = vpop.xlane.xlu0 %399  ;;  %v425_v5 = vmul.f32 %v839_v3, %v823_v30  ;;  %v99_v3 = vld [vmem:[#allocation5 + $0xb8] sm:$0xff] }
 0x2db   :  { %840 = vrcp.f32 %v400_v4  ;;  %v91_v4 = vld [vmem:[#allocation5 + $0x78] sm:$0xff] }
 0x2dc   :  { %779 = vmatmul.msk.f32.gmra.mxu2 %vm343_vm8, %v425_v5  ;;  %v83_v5 = vld [vmem:[#allocation5 + $0x38] sm:$0xff] }
 0x2e1   :  { %v841_v6 = vpop.eup %840 }
 0x2e2   :  { %v403_v7 = vpop.xlane.xlu1 %402  ;;  %v426_v8 = vmul.f32 %v841_v6, %v825_v35 }
 0x2e3   :  { %842 = vrcp.f32 %v403_v7 }
 0x2e4   :  { %780 = vmatmul.msk.f32.gmra.mxu2 %vm343_vm8, %v426_v8 }
 0x2e9   :  { %v843_v9 = vpop.eup %842 }
 0x2ea   :  { %v406_v10 = vpop.xlane.xlu2 %405  ;;  %v427_v11 = vmul.f32 %v843_v9, %v827_v40 }
 0x2eb   :  { %844 = vrcp.f32 %v406_v10 }
 0x2ec   :  { %781 = vmatmul.msk.f32.gmra.mxu2 %vm343_vm8, %v427_v11 }
 0x2f1   :  { %v845_v16 = vpop.eup %844 }
 0x2f2   :  { %v409_v17 = vpop.xlane.xlu0 %408  ;;  %v428_v18 = vmul.f32 %v845_v16, %v829_v46 }
 0x2f3   :  { %846 = vrcp.f32 %v409_v17  ;;  %v606_v17 = vperm.slane %v1011_v43, 1  ;;  %v718_v43 = vld [vmem:[%s1138_s4 + $0x78] sm:$0xff] }
 0x2f4   :  { %782 = vmatmul.msk.f32.gmra.mxu2 %vm343_vm8, %v428_v18 }
 0x2f9   :  { %v847_v19 = vpop.eup %846 }
 0x2fa   :  { %v412_v20 = vpop.xlane.xlu1 %411  ;;  %v429_v21 = vmul.f32 %v847_v19, %v831_v51 }
 0x2fb   :  { %848 = vrcp.f32 %v412_v20 }
 0x2fc   :  { %783 = vmatmul.msk.f32.gmra.mxu2 %vm343_vm8, %v429_v21 }
 0x301   :  { %v849_v23 = vpop.eup %848 }
 0x302   :  { %v415_v24 = vpop.xlane.xlu2 %414  ;;  %v430_v25 = vmul.f32 %v849_v23, %v833_v56 }
 0x303   :  { %850 = vrcp.f32 %v415_v24 }
 0x304   :  { %784 = vmatmul.msk.f32.gmra.mxu2 %vm343_vm8, %v430_v25 }
 0x309   :  { %v851_v26 = vpop.eup %850 }
 0x30a   :  { %v431_v27 = vmul.f32 %v851_v26, %v835_v59  ;;  %v98_v59 = vld [vmem:[#allocation5 + $0xb0] sm:$0xff] }
 0x30c   :  { %785 = vmatmul.msk.f32.gmra.mxu2 %vm343_vm8, %v431_v27 }
 0x357   :  { %v473_v28 = vpop.f32.mrf.mxu2 }
 0x358   :  { %786 = vmatmul.msk.f32.vlgmr.msrb.gmra.mxu3 %vm110_vm0, %v473_v28  ;;  %v717_v28 = vld [vmem:[%s1138_s4 + $0x70] sm:$0xff] }
 0x35f   :  { %v476_v29 = vpop.f32.mrf.mxu2 }
 0x360   :  { %787 = vmatmul.msk.f32.gmra.mxu3 %vm110_vm0, %v476_v29  ;;  %v716_v29 = vld [vmem:[%s1138_s4 + $0x68] sm:$0xff] }
 0x367   :  { %v479_v30 = vpop.f32.mrf.mxu2 }
 0x368   :  { %788 = vmatmul.msk.f32.gmra.mxu3 %vm110_vm0, %v479_v30  ;;  %v715_v30 = vld [vmem:[%s1138_s4 + $0x60] sm:$0xff] }
 0x36f   :  { %v482_v31 = vpop.f32.mrf.mxu2 }
 0x370   :  { %789 = vmatmul.msk.f32.gmra.mxu3 %vm110_vm0, %v482_v31  ;;  %v714_v31 = vld [vmem:[%s1138_s4 + $0x58] sm:$0xff] }
 0x377   :  { %v485_v32 = vpop.f32.mrf.mxu2 }
 0x378   :  { %790 = vmatmul.msk.f32.gmra.mxu3 %vm110_vm0, %v485_v32  ;;  %v713_v32 = vld [vmem:[%s1138_s4 + $0x50] sm:$0xff] }
 0x37f   :  { %v488_v33 = vpop.f32.mrf.mxu2 }
 0x380   :  { %791 = vmatmul.msk.f32.gmra.mxu3 %vm110_vm0, %v488_v33  ;;  %v712_v33 = vld [vmem:[%s1138_s4 + $0x48] sm:$0xff] }
 0x387   :  { %v491_v34 = vpop.f32.mrf.mxu2 }
 0x388   :  { %792 = vmatmul.msk.f32.gmra.mxu3 %vm110_vm0, %v491_v34  ;;  %v711_v34 = vld [vmem:[%s1138_s4 + $0x40] sm:$0xff] }
 0x38f   :  { %v494_v35 = vpop.f32.mrf.mxu2 }
 0x390   :  { %793 = vmatmul.msk.f32.gmra.mxu3 %vm110_vm0, %v494_v35  ;;  %v710_v35 = vld [vmem:[%s1138_s4 + $0x38] sm:$0xff] }
 0x3db   :  { %v538_v36 = vpop.f32.mrf.mxu3 }
 0x3e3   :  { %v541_v37 = vpop.f32.mrf.mxu3 }
 0x3eb   :  { %v544_v38 = vpop.f32.mrf.mxu3 }
 0x3ec   :  { %v562_v42 = vadd.f32 %v544_v38, %v538_v36  ;;  %v709_v36 = vld [vmem:[%s1138_s4 + $0x30] sm:$0xff]  ;;  %v707_v38 = vld [vmem:[%s1138_s4 + $0x20] sm:$0xff] }
 0x3f3   :  { %v547_v39 = vpop.f32.mrf.mxu3 }
 0x3f4   :  { %v563_v48 = vadd.f32 %v547_v39, %v541_v37  ;;  %v708_v37 = vld [vmem:[%s1138_s4 + $0x28] sm:$0xff]  ;;  %v706_v39 = vld [vmem:[%s1138_s4 + $0x18] sm:$0xff] }
 0x3fb   :  { %v550_v40 = vpop.f32.mrf.mxu3 }
 0x3fc   :  { %v564_v44 = vadd.f32 %v562_v42, %v550_v40  ;;  %v705_v40 = vld [vmem:[%s1138_s4 + $0x10] sm:$0xff]  ;;  %v703_v42 = vld [vmem:[%s1138_s4] sm:$0xff] }
 0x403   :  { %v553_v41 = vpop.f32.mrf.mxu3 }
 0x404   :  { %v565_v50 = vadd.f32 %v563_v48, %v553_v41  ;;  %v704_v41 = vld [vmem:[%s1138_s4 + $0x8] sm:$0xff]  ;;  %s949_s4 = smov [#allocation7]  }
 0x405   :  { %s752_s12 = sshll.u32 %s949_s4, 4  ;;  %s753_s12 = int_to_ptr.vmem [resolvable:$true] %s752_s12 }
 0x40b   :  { %v556_v45 = vpop.f32.mrf.mxu3 }
 0x40c   :  { %v566_v46 = vadd.f32 %v564_v44, %v556_v45 }
 0x40e   :  { %v568_v47 = vmul.f32 0.5, %v566_v46 }
 0x410   :  { %v1059_v49 = vadd.f32 %v568_v47, %v998_v2  ;;  %v106_v2 = vld [vmem:[#allocation5 + $0xf0] sm:$0xff] }
 0x411   :  { %627 = vmatpush.msra.mxu0 %v106_v2 }
 0x412   :  { %v572_v51 = vmul.f32 %v1059_v49, %v1059_v49 }
 0x413   :  { %v559_v52 = vpop.f32.mrf.mxu3  ;;  %628 = vmatpush.msra.mxu0 %v98_v59 }
 0x414   :  { %v567_v53 = vadd.f32 %v565_v50, %v559_v52  ;;  %v574_v54 = vsel %vm110_vm0, %v572_v51, 0.0 }
 0x415   :  { %575 = vadd.xlane.f32.xlu0 %v574_v54  ;;  %629 = vmatpush.msra.mxu0 %v90_v60 }
 0x416   :  { %v569_v55 = vmul.f32 0.5, %v567_v53 }
 0x417   :  { %630 = vmatpush.msra.mxu0 %v82_v61 }
 0x418   :  { %v1065_v56 = vadd.f32 %v569_v55, %v991_v0  ;;  %v107_v0 = vld [vmem:[#allocation5 + $0xf8] sm:$0xff] }
 0x419   :  { %650 = vmatpush.msrb.mxu0 %v107_v0 }
 0x41a   :  { %v573_v57 = vmul.f32 %v1065_v56, %v1065_v56 }
 0x41b   :  { %651 = vmatpush.msrb.mxu0 %v99_v3 }
 0x41c   :  { %v577_v58 = vsel %vm110_vm0, %v573_v57, 0.0 }
 0x41d   :  { %578 = vadd.xlane.f32.xlu1 %v577_v58  ;;  %652 = vmatpush.msrb.mxu0 %v91_v4 }
 0x41f   :  { %653 = vmatpush.msrb.mxu0 %v83_v5 }
 0x488   :  { %v576_v62 = vpop.xlane.xlu0 %575 }
 0x489   :  { %v580_v63 = vmul.f32 %v576_v62, %v1004_v22 }
 0x48b   :  { %v582_v1 = vadd.f32 1e-05, %v580_v63 }
 0x48d   :  { %852 = vrsqrt.f32 %v582_v1  ;;  %vm590_vm10 = vweird.f32 %v582_v1 }
 0x490   :  { %v579_v6 = vpop.xlane.xlu1 %578 }
 0x491   :  { %v581_v7 = vmul.f32 %v579_v6, %v1004_v22 }
 0x493   :  { %v853_v8 = vpop.eup %852  ;;  %v583_v9 = vadd.f32 1e-05, %v581_v7 }
 0x494   :  { %v585_v10 = vmul.f32 %v853_v8, %v582_v1  ;;  %vm591_vm9 = vweird.f32 %v853_v8 }
 0x495   :  { %854 = vrsqrt.f32 %v583_v9  ;;  %vm592_vm11 = vmor %vm590_vm10, %vm591_vm9  ;;  %vm600_vm13 = vweird.f32 %v583_v9 }
 0x496   :  { %v586_v11 = vmul.f32 %v853_v8, %v585_v10 }
 0x498   :  { %v587_v12 = vmul.f32 0.5, %v586_v11 }
 0x49a   :  { %v588_v13 = vsub.f32 1.5, %v587_v12 }
 0x49b   :  { %v855_v14 = vpop.eup %854 }
 0x49c   :  { %v589_v15 = vmul.f32 %v853_v8, %v588_v13  ;;  %v595_v16 = vmul.f32 %v855_v14, %v583_v9  ;;  %vm601_vm12 = vweird.f32 %v855_v14 }
 0x49d   :  { %vm602_vm14 = vmor %vm600_vm13, %vm601_vm12 }
 0x49e   :  { %v593_v18 = vsel %vm592_vm11, %v853_v8, %v589_v15  ;;  %v596_v19 = vmul.f32 %v855_v14, %v595_v16 }
 0x49f   :  { %v604_v22 = vmul.f32 %v593_v18, %v1059_v49 }
 0x4a0   :  { %v597_v20 = vmul.f32 0.5, %v596_v19 }
 0x4a1   :  { %v607_v21 = vmul.f32 %v606_v17, %v604_v22 }
 0x4a2   :  { %v598_v23 = vsub.f32 1.5, %v597_v20 }
 0x4a3   :  { %794 = vmatmul.msk.f32.vlgmr.msra.gmra.mxu0 %vm110_vm0, %v607_v21 }
 0x4a4   :  { %v599_v24 = vmul.f32 %v855_v14, %v598_v23  ;;  %719 = vmatpush.msra.mxu0 %v718_v43 }
 0x4a6   :  { %v603_v25 = vsel %vm602_vm14, %v855_v14, %v599_v24  ;;  %720 = vmatpush.msra.mxu0 %v717_v28 }
 0x4a7   :  { %v605_v26 = vmul.f32 %v603_v25, %v1065_v56 }
 0x4a8   :  { %721 = vmatpush.msra.mxu0 %v716_v29 }
 0x4a9   :  { %v608_v27 = vmul.f32 %v606_v17, %v605_v26 }
 0x4aa   :  { %722 = vmatpush.msra.mxu0 %v715_v30 }
 0x4ab   :  { %795 = vmatmul.msk.f32.gmra.mxu0 %vm110_vm0, %v608_v27 }
 0x4ac   :  { %723 = vmatpush.msra.mxu0 %v714_v31 }
 0x4ae   :  { %724 = vmatpush.msra.mxu0 %v713_v32 }
 0x4b0   :  { %725 = vmatpush.msra.mxu0 %v712_v33 }
 0x4b2   :  { %726 = vmatpush.msra.mxu0 %v711_v34 }
 0x4b3   :  { %796 = vmatmul.msk.f32.vlgmr.msrb.gmra.mxu0 %vm110_vm0, %v607_v21 }
 0x4b4   :  { %727 = vmatpush.msra.mxu0 %v710_v35 }
 0x4b6   :  { %728 = vmatpush.msra.mxu0 %v709_v36 }
 0x4b8   :  { %729 = vmatpush.msra.mxu0 %v708_v37 }
 0x4ba   :  { %730 = vmatpush.msra.mxu0 %v707_v38 }
 0x4bb   :  { %797 = vmatmul.msk.f32.gmra.mxu0 %vm110_vm0, %v608_v27 }
 0x4bc   :  { %731 = vmatpush.msra.mxu0 %v706_v39 }
 0x4be   :  { %732 = vmatpush.msra.mxu0 %v705_v40 }
 0x4c0   :  { %733 = vmatpush.msra.mxu0 %v704_v41 }
 0x4c2   :  { %734 = vmatpush.msra.mxu0 %v703_v42 }
 0x520   :  { %v632_v44 = vpop.f32.mrf.mxu0 }
 0x521   :  { %v798_v45 = vmul.f32 -1.442695, %v632_v44 }
 0x523   :  { %856 = vpow2.f32 %v798_v45 }
 0x528   :  { %v635_v46 = vpop.f32.mrf.mxu0 }
 0x529   :  { %v857_v47 = vpop.eup %856  ;;  %v799_v48 = vmul.f32 -1.442695, %v635_v46 }
 0x52a   :  { %v667_v50 = vadd.f32 1.0, %v857_v47 }
 0x52b   :  { %858 = vpow2.f32 %v799_v48 }
 0x52c   :  { %860 = vrcp.f32 %v667_v50  ;;  %v680_v57 = vand.u32 2147483648, %v667_v50  ;;  %v678_v2 = vand.u32 2147483647, %v667_v50  ;;  %vm674_vm1 = vweird.f32 %v667_v50 }
 0x52e   :  { %v681_v61 = vor.u32 1.1754944e-38, %v680_v57  ;;  %vm679_vm3 = vcmp.eq.f32.partialorder %v678_v2, 8.507059e+37 }
 0x530   :  { %v655_v0 = vpop.f32.mrf.mxu0 }
 0x531   :  { %v859_v51 = vpop.eup %858 }
 0x532   :  { %v861_v52 = vpop.eup %860  ;;  %v668_v53 = vadd.f32 1.0, %v859_v51 }
 0x533   :  { %v670_v54 = vmul.f32 %v861_v52, %v667_v50  ;;  %vm675_vm15 = vweird.f32 %v861_v52 }
 0x534   :  { %862 = vrcp.f32 %v668_v53  ;;  %vm676_vm2 = vmor %vm674_vm1, %vm675_vm15  ;;  %v695_v5 = vand.u32 2147483648, %v668_v53  ;;  %v693_v7 = vand.u32 2147483647, %v668_v53  ;;  %vm689_vm5 = vweird.f32 %v668_v53 }
 0x535   :  { %v671_v55 = vsub.f32 1.0, %v670_v54 }
 0x536   :  { %v696_v10 = vor.u32 1.1754944e-38, %v695_v5  ;;  %vm694_vm7 = vcmp.eq.f32.partialorder %v693_v7, 8.507059e+37 }
 0x537   :  { %v672_v58 = vmul.f32 %v861_v52, %v671_v55 }
 0x538   :  { %v658_v14 = vpop.f32.mrf.mxu0 }
 0x539   :  { %v673_v59 = vadd.f32 %v861_v52, %v672_v58 }
 0x53a   :  { %v863_v60 = vpop.eup %862 }
 0x53b   :  { %v677_v62 = vsel %vm676_vm2, %v861_v52, %v673_v59  ;;  %v685_v63 = vmul.f32 %v863_v60, %v668_v53  ;;  %vm690_vm4 = vweird.f32 %v863_v60 }
 0x53c   :  { %v682_v1 = vsel %vm679_vm3, %v681_v61, %v677_v62  ;;  %vm691_vm6 = vmor %vm689_vm5, %vm690_vm4 }
 0x53d   :  { %v699_v3 = vmul.f32 %v682_v1, %v632_v44  ;;  %v686_v4 = vsub.f32 1.0, %v685_v63 }
 0x53f   :  { %v687_v6 = vmul.f32 %v863_v60, %v686_v4  ;;  %v701_v8 = vmul.f32 %v699_v3, %v655_v0 }
 0x541   :  { %v688_v9 = vadd.f32 %v863_v60, %v687_v6  ;;  %735 = vmatmul.f32.vlgmr.msra.gmra.mxu0 %v701_v8 }
 0x543   :  { %v692_v11 = vsel %vm691_vm6, %v863_v60, %v688_v9 }
 0x544   :  { %v697_v12 = vsel %vm694_vm7, %v696_v10, %v692_v11 }
 0x545   :  { %v700_v13 = vmul.f32 %v697_v12, %v635_v46 }
 0x547   :  { %v702_v15 = vmul.f32 %v700_v13, %v658_v14 }
 0x549   :  { %738 = vmatmul.f32.gmra.mxu0 %v702_v15 }
 0x5be   :  { %v736_v16 = vpop.f32.mrf.mxu0 }
 0x5bf   :  { %v742_v17 = vmul.f32 0.5, %v736_v16 }
 0x5c1   :  { %v744_v18 = vadd.f32 %v742_v17, %v1059_v49 }
 0x5c3   :  { %746 = vst.msk [vmem:[#allocation7] sm:$0xff] %vm110_vm0, %v744_v18 }
 0x5c6   :  { %v739_v19 = vpop.f32.mrf.mxu0 }
 0x5c7   :  { %v743_v22 = vmul.f32 0.5, %v739_v19 }
 0x5c9   :  { %v745_v20 = vadd.f32 %v743_v22, %v1065_v56 }
 0x5cb   :  { %747 = vst.msk [vmem:[#allocation7 + $0x8] sm:$0xff] %vm110_vm0, %v745_v20 }
 0x5cc   :  { %760 = dma.vmem_to_hbm [thread:$0]  %s753_s12, 256, %s755_s15, [#allocation4], %s950_s16, %s950_s16, %s951_s17  }
 0x5cd   :  { %940 = dma.done.wait [#allocation4], 256  }
 0x5ce   :  { %941 = vsyncadd [#allocation4], 4294967040 }
 0x5cf   :  { %765 = vsyncpa [#allocation3], 1 }
 0x5d0   :  { %766 = vsyncpa [#allocation6], 1 }
 0x5d1   :  { %767 = vsyncpa [#allocation4], 1 }

</bundles_post_ra>
